<compile_context>
chip_gen: v6e
topology: v6e:2x2x1
jax: 0.10.0
libtpu: 0.0.40
codegen_flags: <defaults>
</compile_context>

<pallas_src>
import functools

import jax
import jax.numpy as jnp
from jax.experimental import pallas as pl
from jax.experimental.pallas import tpu as pltpu


def generate_voxel_grid(xlim, ylim, zlim, w, h, d):
    """JAX port of generateVoxelGrid (torch.meshgrid default 'ij' indexing)."""
    xr = jnp.linspace(xlim[0], xlim[1], w)
    yr = jnp.linspace(ylim[0], ylim[1], h)
    zr = jnp.linspace(zlim[0], zlim[1], d)
    gz, gy, gx = jnp.meshgrid(zr, yr, xr, indexing="ij")
    return jnp.stack([gx.reshape(-1), gy.reshape(-1), gz.reshape(-1)], axis=1)


def _object_encoder_kernel(geo_ref, w1_ref, slab_ref, out_ref, *,
                           nm_hid, n_points, tile_n, nt_inner):
    s = pl.program_id(1)        # parallel point-tile split
    t = pl.program_id(2)        # sequential point-tile axis

    geo = geo_ref[0]                                        # (G+1, TN)   points on lanes
    w1 = w1_ref[0]                                          # (nM*Hid, G+1) bias folded in
    w23 = slab_ref[:, 0:nm_hid]                             # (nM*F2, nM*Hid) block-diag
    b23 = slab_ref[:, nm_hid:nm_hid + 1].astype(jnp.float32)  # (nM*F2, 1)

    # layer-1 for all masks in one MXU push; bias rides on geo's ones-row
    h = jnp.maximum(jnp.dot(w1, geo, preferred_element_type=jnp.float32), 0.0)
    # fused (w2 @ w3) layer + ReLU, all masks in one block-diagonal MXU push
    c = jnp.maximum(
        jnp.dot(w23, h.astype(w23.dtype), preferred_element_type=jnp.float32) + b23,
        0.0)                                                # (nM*F2, TN)  f32

    # zero contributions from padded point lanes (N not a multiple of tile_n)
    start = (s * nt_inner + t) * tile_n
    lane = jax.lax.broadcasted_iota(jnp.int32, (1, tile_n), 1) + start
    c = c * (lane < n_points).astype(jnp.float32)

    psum = jnp.sum(c, axis=1, keepdims=True)                # lane reduce -> (nM*F2, 1)

    @pl.when(t == 0)
    def _():
        out_ref[...] = jnp.zeros_like(out_ref)
    out_ref[0, 0] += psum                                    # single accumulate per tile


def object_encoder_forward(I, M, KT, X, params, *, compute_dtype=jnp.bfloat16,
                           max_tile_n=512):
    """ObjectEncoder forward.  compute_dtype controls the MXU operand precision
    (accumulation and elementwise math stay float32)."""
    B, V, C, _, _ = I.shape
    nM = M.shape[2]
    N = X.shape[0]

    # ---------------- plain-JAX glue (tiny at these sizes) --------------------
    # TODO(synk): per-point bilinear image sampling (grid_sample-style gather) has
    #             no clean Pallas equivalent here; mask-weighted global pooling is used.
    # TODO(synk): for realistic H/W the pooling & projection einsums below dominate
    #             wall-clock and could be fused into a second Pallas kernel.
    Xb = jnp.broadcast_to(X[None], (B, N, 3))                      # X.unsqueeze(0).expand
    Xh = jnp.concatenate([Xb, jnp.ones((B, N, 1), X.dtype)], axis=-1)
    proj = jnp.einsum("bna,bvac->bvnc", Xh, KT)                    # (B,V,N,3)
    uv = proj[..., :2] / (jnp.abs(proj[..., 2:3]) + 1e-3)
    geo = jnp.concatenate([Xb, uv.mean(axis=1)], axis=-1)          # (B,N,G)

    msum = M.sum(axis=(3, 4)) + 1e-6
    pooled = (jnp.einsum("bvchw,bvmhw->bvmc", I, M) / msum[..., None]).mean(axis=1)
    mask_bias = pooled @ params["w1c"] + params["b1"]              # (B,nM,Hid)

    G = geo.shape[-1]
    Hid = params["w1g"].shape[1]
    F2 = params["w3"].shape[1]
    nm_hid = nM * Hid
    nm_f2 = nM * F2

    # ------------- point-axis tiling (<=512 lanes keeps vregs unspilled) ------
    assert max_tile_n % 128 == 0
    tile_n = min(max_tile_n, ((N + 127) // 128) * 128)
    n_tiles = (N + tile_n - 1) // tile_n
    n_pad = n_tiles * tile_n
    # split point tiles across a second *parallel* axis when B alone cannot feed
    # both v7x TensorCores (harmless short sequential loop on v5e/v6e)
    ns = 2 if (B == 1 and n_tiles >= 2 and n_tiles % 2 == 0) else 1
    nt_inner = n_tiles // ns

    # geo + ones-row (carries folded layer-1 bias), points on lanes, padded to n_pad
    geo_aug = jnp.concatenate([geo, jnp.ones((B, N, 1), geo.dtype)], axis=-1)
    if n_pad > N:
        geo_aug = jnp.pad(geo_aug, ((0, 0), (0, n_pad - N), (0, 0)))
    geo_t = jnp.swapaxes(geo_aug, 1, 2).astype(compute_dtype)      # (B, G+1, n_pad)

    # per-batch stacked layer-1 weights: nM vertical blocks of [w1g^T | bias_{b,m}]
    w1g_rep = jnp.broadcast_to(params["w1g"].T[None, None], (B, nM, Hid, G))
    w1_stack = jnp.concatenate([w1g_rep, mask_bias[..., None]], axis=-1)
    w1_stack = w1_stack.reshape(B, nm_hid, G + 1).astype(compute_dtype)

    # resident slab: block-diagonal fused (w2 @ w3)^T plus its bias column
    # (exact fold: no nonlinearity between the two linear layers)
    W23_t = (params["w2"] @ params["w3"]).T                        # (F2, Hid)
    b23 = (params["b2"] @ params["w3"] + params["b3"]).reshape(-1)  # (F2,)
    cols = max(128, ((nm_hid + 1 + 127) // 128) * 128)
    slab = jnp.zeros((nm_f2, cols), jnp.float32)
    slab = slab.at[:, :nm_hid].set(jnp.kron(jnp.eye(nM, dtype=jnp.float32), W23_t))
    slab = slab.at[:, nm_hid].set(jnp.tile(b23, nM))
    slab = slab.astype(compute_dtype)

    kernel = functools.partial(_object_encoder_kernel, nm_hid=nm_hid,
                               n_points=N, tile_n=tile_n, nt_inner=nt_inner)

    psums = pl.pallas_call(
        kernel,
        out_shape=jax.ShapeDtypeStruct((B, ns, nm_f2, 1), jnp.float32),
        grid_spec=pltpu.PrefetchScalarGridSpec(
            num_scalar_prefetch=0,
            grid=(B, ns, nt_inner),
            in_specs=[
                pl.BlockSpec((1, G + 1, tile_n),
                             lambda b, s, t: (b, 0, s * nt_inner + t)),
                pl.BlockSpec((1, nm_hid, G + 1), lambda b, s, t: (b, 0, 0)),
                pl.BlockSpec((nm_f2, cols), lambda b, s, t: (0, 0)),
            ],
            out_specs=pl.BlockSpec((1, 1, nm_f2, 1), lambda b, s, t: (b, s, 0, 0)),
        ),
        # VMEM footprint here is a few tens of KB; if N/tile_n are scaled up,
        # bound the geo double-buffer via CompilerParams(vmem_limit_bytes=...)
        # (v7x has 64 MiB VMEM, v5e/v6e 128 MiB).
        compiler_params=pltpu.CompilerParams(
            dimension_semantics=("parallel", "parallel", "arbitrary")),
    )(geo_t, w1_stack, slab)

    # finishing add over the parallel point split + feature-volume head (tiny, f32)
    mean = psums[..., 0].sum(axis=1).reshape(B, nM, F2) / float(N)
    return mean @ params["w4"] + params["b4"]                      # (B, nM, K)


def object_encoder_reference(I, M, KT, X, params):
    """Pure-JAX f32 reference for correctness checking (unfused layers)."""
    B, V, C, _, _ = I.shape
    nM = M.shape[2]
    N = X.shape[0]
    Xb = jnp.broadcast_to(X[None], (B, N, 3))
    Xh = jnp.concatenate([Xb, jnp.ones((B, N, 1), X.dtype)], axis=-1)
    proj = jnp.einsum("bna,bvac->bvnc", Xh, KT)
    uv = proj[..., :2] / (jnp.abs(proj[..., 2:3]) + 1e-3)
    geo = jnp.concatenate([Xb, uv.mean(axis=1)], axis=-1)          # (B,N,G)
    msum = M.sum(axis=(3, 4)) + 1e-6
    pooled = (jnp.einsum("bvchw,bvmhw->bvmc", I, M) / msum[..., None]).mean(axis=1)

    h = jnp.maximum(geo[:, None] @ params["w1g"]
                    + (pooled @ params["w1c"])[:, :, None] + params["b1"], 0.0)
    y = h @ params["w2"] + params["b2"]                            # (B,nM,N,F)
    c = jnp.maximum(y @ params["w3"] + params["b3"], 0.0)          # (B,nM,N,F2)
    mean = c.mean(axis=2)                                          # (B,nM,F2)
    return mean @ params["w4"] + params["b4"]                      # (B,nM,K)


if __name__ == "__main__":
    key = jax.random.PRNGKey(0)
    B, V, C, Himg, Wimg = 2, 2, 4, 16, 16
    nM = 3
    w, h, d = 8, 8, 8           # voxel grid -> N = 512 points
    Hid, F, F2, K = 32, 16, 32, 8

    X = generate_voxel_grid((-1.0, 1.0), (-1.0, 1.0), (-1.0, 1.0), w, h, d)

    keys = jax.random.split(key, 12)
    I = jax.random.normal(keys[0], (B, V, C, Himg, Wimg), jnp.float32)
    M = jax.nn.sigmoid(jax.random.normal(keys[1], (B, V, nM, Himg, Wimg), jnp.float32))
    KT = jax.random.normal(keys[2], (B, V, 4, 3), jnp.float32)

    params = {
        "w1g": 0.1 * jax.random.normal(keys[3], (5, Hid), jnp.float32),
        "w1c": 0.1 * jax.random.normal(keys[4], (C, Hid), jnp.float32),
        "b1":  0.1 * jax.random.normal(keys[5], (1, Hid), jnp.float32),
        "w2":  0.1 * jax.random.normal(keys[6], (Hid, F), jnp.float32),
        "b2":  0.1 * jax.random.normal(keys[7], (1, F), jnp.float32),
        "w3":  0.1 * jax.random.normal(keys[8], (F, F2), jnp.float32),
        "b3":  0.1 * jax.random.normal(keys[9], (1, F2), jnp.float32),
        "w4":  0.1 * jax.random.normal(keys[10], (F2, K), jnp.float32),
        "b4":  0.1 * jax.random.normal(keys[11], (1, K), jnp.float32),
    }

    z_ref = object_encoder_reference(I, M, KT, X, params)

    # exact-precision path (f32 MXU operands)
    z32 = jax.block_until_ready(
        object_encoder_forward(I, M, KT, X, params, compute_dtype=jnp.float32))
    assert z32.shape == (B, nM, K)
    if not jnp.allclose(z32, z_ref, rtol=2e-3, atol=2e-3):
        raise AssertionError("f32 Pallas kernel output mismatch vs JAX reference")

    # default path: bf16 MXU operands, f32 accumulation (bf16-level tolerance)
    zbf = jax.block_until_ready(object_encoder_forward(I, M, KT, X, params))
    if not jnp.allclose(zbf, z_ref, rtol=1e-2, atol=1e-2):
        raise AssertionError("bf16 Pallas kernel output mismatch vs JAX reference")

    # second config: B=1 exercises the parallel point-tile split, multi-tile
    # sequential accumulation and the padded-lane mask (N = 12^3 = 1728)
    X2 = generate_voxel_grid((-1.0, 1.0), (-1.0, 1.0), (-1.0, 1.0), 12, 12, 12)
    keys2 = jax.random.split(jax.random.PRNGKey(1), 3)
    I2 = jax.random.normal(keys2[0], (1, V, C, Himg, Wimg), jnp.float32)
    M2 = jax.nn.sigmoid(jax.random.normal(keys2[1], (1, V, nM, Himg, Wimg), jnp.float32))
    KT2 = jax.random.normal(keys2[2], (1, V, 4, 3), jnp.float32)
    z2 = jax.block_until_ready(
        object_encoder_forward(I2, M2, KT2, X2, params, compute_dtype=jnp.float32))
    z2_ref = object_encoder_reference(I2, M2, KT2, X2, params)
    if not jnp.allclose(z2, z2_ref, rtol=2e-3, atol=2e-3):
        raise AssertionError("split/masked-path kernel output mismatch vs JAX reference")

    print("KERNEL_OK")
</pallas_src>

<mosaic_0001>
module attributes {stable_mosaic.version = 11 : i64} {
  func.func @_object_encoder_kernel(%arg0: i32, %arg1: i32, %arg2: i32, %arg3: memref<1x6x512xf32, #tpu.memory_space<vmem>>, %arg4: memref<1x96x6xf32, #tpu.memory_space<vmem>>, %arg5: memref<96x128xf32, #tpu.memory_space<vmem>>, %arg6: memref<1x1x96x1xf32, #tpu.memory_space<vmem>>) attributes {dimension_semantics = [#tpu.dimension_semantics<parallel>, #tpu.dimension_semantics<parallel>, #tpu.dimension_semantics<arbitrary>], iteration_bounds = array<i64: 2, 1, 1>, scalar_prefetch = 0 : i64, scratch_operands = 0 : i64, tpu.core_type = #tpu.core_type<tc>, window_params = [{transform_indices = @transform_0, window_bounds = array<i64: 1, 6, 512>}, {transform_indices = @transform_1, window_bounds = array<i64: 1, 96, 6>}, {pipeline_mode = #tpu.pipeline_mode<synchronous>, transform_indices = @transform_2, window_bounds = array<i64: 96, 128>}, {transform_indices = @transform_3, window_bounds = array<i64: 1, 1, 96, 1>}]} {
    %c0 = arith.constant 0 : index
    %c0_0 = arith.constant 0 : index
    %c0_1 = arith.constant 0 : index
    %0 = vector.load %arg3[%c0, %c0_0, %c0_1] : memref<1x6x512xf32, #tpu.memory_space<vmem>>, vector<1x6x512xf32>
    %1 = vector.shape_cast %0 : vector<1x6x512xf32> to vector<6x512xf32>
    %c0_2 = arith.constant 0 : index
    %c0_3 = arith.constant 0 : index
    %c0_4 = arith.constant 0 : index
    %2 = vector.load %arg4[%c0_2, %c0_3, %c0_4] : memref<1x96x6xf32, #tpu.memory_space<vmem>>, vector<1x96x6xf32>
    %3 = vector.shape_cast %2 : vector<1x96x6xf32> to vector<96x6xf32>
    %c0_5 = arith.constant 0 : index
    %c0_6 = arith.constant 0 : index
    %4 = vector.load %arg5[%c0_5, %c0_6] : memref<96x128xf32, #tpu.memory_space<vmem>>, vector<96x96xf32>
    %c0_7 = arith.constant 0 : index
    %c96 = arith.constant 96 : index
    %5 = vector.load %arg5[%c0_7, %c96] : memref<96x128xf32, #tpu.memory_space<vmem>>, vector<96x1xf32>
    %cst = arith.constant dense<0.000000e+00> : vector<96x512xf32>
    %6 = tpu.matmul %3, %1, %cst {dimension_numbers = #tpu.dot_dimension_numbers<[1], [0], [0], [1], [0, 0, 1, 1], [], []>} : vector<96x6xf32>, vector<6x512xf32>, vector<96x512xf32> -> vector<96x512xf32>
    %cst_8 = arith.constant 0.000000e+00 : f32
    %7 = vector.broadcast %cst_8 : f32 to vector<96x512xf32>
    %8 = arith.maximumf %6, %7 : vector<96x512xf32>
    %cst_9 = arith.constant dense<0.000000e+00> : vector<96x512xf32>
    %9 = tpu.matmul %4, %8, %cst_9 {dimension_numbers = #tpu.dot_dimension_numbers<[1], [0], [0], [1], [0, 0, 1, 1], [], []>} : vector<96x96xf32>, vector<96x512xf32>, vector<96x512xf32> -> vector<96x512xf32>
    %10 = vector.broadcast %5 : vector<96x1xf32> to vector<96x512xf32>
    %11 = arith.addf %9, %10 : vector<96x512xf32>
    %cst_10 = arith.constant 0.000000e+00 : f32
    %12 = vector.broadcast %cst_10 : f32 to vector<96x512xf32>
    %13 = arith.maximumf %11, %12 : vector<96x512xf32>
    %c1_i32 = arith.constant 1 : i32
    %14 = arith.muli %arg1, %c1_i32 : i32
    %15 = arith.addi %14, %arg2 : i32
    %c512_i32 = arith.constant 512 : i32
    %16 = arith.muli %15, %c512_i32 : i32
    %17 = tpu.iota {dimensions = array<i32: 1>} : vector<1x512xi32>
    %18 = vector.broadcast %16 : i32 to vector<1x512xi32>
    %19 = arith.addi %17, %18 : vector<1x512xi32>
    %c512_i32_11 = arith.constant 512 : i32
    %20 = vector.broadcast %c512_i32_11 : i32 to vector<1x512xi32>
    %21 = arith.cmpi slt, %19, %20 : vector<1x512xi32>
    %22 = arith.extui %21 : vector<1x512xi1> to vector<1x512xi32>
    %23 = arith.sitofp %22 : vector<1x512xi32> to vector<1x512xf32>
    %24 = vector.broadcast %23 : vector<1x512xf32> to vector<96x512xf32>
    %25 = arith.mulf %13, %24 : vector<96x512xf32>
    %cst_12 = arith.constant dense<0.000000e+00> : vector<96xf32>
    %26 = vector.multi_reduction <add>, %25, %cst_12 [1] : vector<96x512xf32> to vector<96xf32>
    %27 = vector.shape_cast %26 : vector<96xf32> to vector<96x1xf32>
    %c0_i32 = arith.constant 0 : i32
    %28 = arith.cmpi eq, %arg2, %c0_i32 : i32
    %29 = arith.extui %28 : i1 to i32
    %c0_i32_13 = arith.constant 0 : i32
    %30 = arith.cmpi ne, %29, %c0_i32_13 : i32
    scf.if %30 {
      %cst_22 = arith.constant 0.000000e+00 : f32
      %37 = vector.broadcast %cst_22 : f32 to vector<1x1x96x1xf32>
      %c0_23 = arith.constant 0 : index
      %c0_24 = arith.constant 0 : index
      %c0_25 = arith.constant 0 : index
      %c0_26 = arith.constant 0 : index
      %38 = vector.load %arg6[%c0_23, %c0_24, %c0_25, %c0_26] : memref<1x1x96x1xf32, #tpu.memory_space<vmem>>, vector<1x1x96x1xf32>
      tpu.vector_store %arg6[%c0_23, %c0_24, %c0_25, %c0_26], %37 {strides = array<i32>} : memref<1x1x96x1xf32, #tpu.memory_space<vmem>>, vector<1x1x96x1xf32>,
    } else {
    }
    %c0_14 = arith.constant 0 : index
    %c0_15 = arith.constant 0 : index
    %c0_16 = arith.constant 0 : index
    %c0_17 = arith.constant 0 : index
    %31 = vector.load %arg6[%c0_14, %c0_15, %c0_16, %c0_17] : memref<1x1x96x1xf32, #tpu.memory_space<vmem>>, vector<1x1x96x1xf32>
    %32 = vector.shape_cast %31 : vector<1x1x96x1xf32> to vector<96x1xf32>
    %33 = arith.addf %32, %27 : vector<96x1xf32>
    %c0_18 = arith.constant 0 : index
    %c0_19 = arith.constant 0 : index
    %c0_20 = arith.constant 0 : index
    %c0_21 = arith.constant 0 : index
    %34 = vector.load %arg6[%c0_18, %c0_19, %c0_20, %c0_21] : memref<1x1x96x1xf32, #tpu.memory_space<vmem>>, vector<1x1x96x1xf32>
    %35 = vector.shape_cast %34 : vector<1x1x96x1xf32> to vector<96x1xf32>
    %36 = vector.shape_cast %33 : vector<96x1xf32> to vector<1x1x96x1xf32>
    tpu.vector_store %arg6[%c0_18, %c0_19, %c0_20, %c0_21], %36 {strides = array<i32>} : memref<1x1x96x1xf32, #tpu.memory_space<vmem>>, vector<1x1x96x1xf32>,
    return
  }
  func.func @transform_0(%arg0: i32, %arg1: i32, %arg2: i32) -> (i32, i32, i32) {
    %c1_i32 = arith.constant 1 : i32
    %0 = arith.muli %arg1, %c1_i32 : i32
    %1 = arith.addi %0, %arg2 : i32
    %c0_i32 = arith.constant 0 : i32
    %c0_i32_0 = arith.constant 0 : i32
    return %arg0, %c0_i32, %1 : i32, i32, i32
  }
  func.func @transform_1(%arg0: i32, %arg1: i32, %arg2: i32) -> (i32, i32, i32) {
    %c0_i32 = arith.constant 0 : i32
    %c0_i32_0 = arith.constant 0 : i32
    %c0_i32_1 = arith.constant 0 : i32
    return %arg0, %c0_i32, %c0_i32_0 : i32, i32, i32
  }
  func.func @transform_2(%arg0: i32, %arg1: i32, %arg2: i32) -> (i32, i32) {
    %c0_i32 = arith.constant 0 : i32
    %c0_i32_0 = arith.constant 0 : i32
    %c0_i32_1 = arith.constant 0 : i32
    return %c0_i32, %c0_i32_0 : i32, i32
  }
  func.func @transform_3(%arg0: i32, %arg1: i32, %arg2: i32) -> (i32, i32, i32, i32) {
    %c0_i32 = arith.constant 0 : i32
    %c0_i32_0 = arith.constant 0 : i32
    %c0_i32_1 = arith.constant 0 : i32
    return %arg0, %arg1, %c0_i32, %c0_i32_0 : i32, i32, i32, i32
  }
}

</mosaic_0001>

<bundles_post_ra>
// kernel: tpu_custom_call.1
= control target key start
LH: loop header
LB: loop body
LE: loop exit
PB: predicated region body
PF: predicated region fallthrough
CT: control target
= control target key end

     0   :  { %s1479_s12 = smov 0   ;;  %s1481_s13 = smov 0   ;;  %s1887_s0 = inlined_call_operand.vmem [shape: f32[2,6,512], index: 0, kind: input, shape index: {}]   ;;  %s1888_s1 = inlined_call_operand.vmem [shape: f32[2,96,6], index: 1, kind: input, shape index: {}]   ;;  %s1889_s2 = inlined_call_operand.vmem [shape: f32[96,128], index: 2, kind: input, shape index: {}]   ;;  %s1890_s3 = inlined_call_operand.vmem [shape: f32[2,1,96,1], index: 3, kind: output, shape index: {}]  }
   0x1   :  { %s1483_s14 = smov 0  }
   0x2 LB: > { %s32_s15 = sadd.s32 1, %s1451_s13  ;;  %p1344_p0 = scmp.ge.s32.totalorder %s1455_s14, 1  ;;  %s1455_s14 = sphi %s1483_s14, %s13_s14   ;;  %s1451_s13 = sphi %s1481_s13, %s1927_s13   ;;  %s1447_s12 = sphi %s1479_s12, %s1926_s12  }
   0x3   : > { %p34_p1 = scmp.ge.s32.totalorder %s32_s15, 2  ;;  %p179_p2 = scmp.lt.s32.totalorder %s1455_s14, 3 }
   0x5   : > { %s1929_s15 = smov (%p34_p1, %s32_s15), 0  ;;  %p180_p3 = pnand %p1344_p0, %p179_p2 }
   0x7   : > { %183 = sbr.rel (%p180_p3) target bundleno = 675 (0x2a3), region = 32 }
   0xc   : > { %p219_p4 = scmp.lt.s32.totalorder %s1447_s12, 1  ;;  %v1891_v0 = vmov 0.0   ;;  %vm308_vm0 = vcmask 1045504   ;;  %vm271_vm1 = vcmask 48128   ;;  %v1576_v17 = vld [vmem:[%s1889_s2] sm:$0xff]  ;;  %v1581_v18 = vld [vmem:[%s1889_s2 + $0x10] sm:$0xff] }
   0xd   : > { %385 = vmatprep.mubr.f32.mxu0 %v1891_v0  ;;  %522 = vmatprep.mubr.f32.mxu1 %v1891_v0  ;;  %v1458_v19 = vmov 96   ;;  %v1588_v20 = vld [vmem:[%s1889_s2 + $0x8] sm:$0xff]  ;;  %v1593_v21 = vld [vmem:[%s1889_s2 + $0x18] sm:$0xff]  ;;  %v1600_v22 = vld [vmem:[%s1889_s2 + $0x20] sm:$0xff]  ;;  %vm703_vm2 = vcmask 785408   ;;  %vm1186_vm3 = vcmask 7168  }
   0xe   : > { %s1931_s12 = smov (!%p219_p4, %s1447_s12), 1  ;;  %1431 = vset.pattern.permute.xlu0 %v1458_v19  ;;  %1432 = vset.pattern.permute.xlu1 %v1458_v19  ;;  %1909 = vst [vmem:[#allocation2_spill] sm:$0xff] %v1600_v22  ;;  %v1605_v23 = vld [vmem:[%s1889_s2 + $0x28] sm:$0xff]  ;;  %v1620_v28 = vld [vmem:[%s1889_s2 + $0x30] sm:$0xff]  ;;  %v1625_v29 = vld [vmem:[%s1889_s2 + $0x38] sm:$0xff] }
   0xf   : > { %s1403_s16 = sshll.u32 %s1931_s12, 5  ;;  %s1404_s17 = smul.u32 96, %s1931_s12  ;;  %645 = vperm.xlu0 %1431, %v1576_v17   ;;  %655 = vperm.xlu1 %1432, %v1581_v18   ;;  %1910 = vst [vmem:[#allocation3_spill] sm:$0xff] %v1605_v23  ;;  %1911 = vst [vmem:[#allocation4_spill] sm:$0xff] %v1620_v28  ;;  %v1640_v34 = vld [vmem:[%s1889_s2 + $0x40] sm:$0xff]  ;;  %v1645_v35 = vld [vmem:[%s1889_s2 + $0x48] sm:$0xff] }
  0x10   : > { %s226_s20 = scalar_lea.vmem %s1887_s0, %s1403_s16  ;;  %1912 = vst [vmem:[#allocation5_spill] sm:$0xff] %v1625_v29  ;;  %1913 = vst [vmem:[#allocation6_spill] sm:$0xff] %v1640_v34  ;;  %v1660_v40 = vld [vmem:[%s1889_s2 + $0x50] sm:$0xff]  ;;  %v1665_v41 = vld [vmem:[%s1889_s2 + $0x58] sm:$0xff] }
  0x11   : > { %s1511_s23 = scalar_lea.vmem %s1888_s1, %s1404_s17  ;;  %v244_v1 = vld [vmem:[%s226_s20 + $0x8] sm:$0x3f]  ;;  %v246_v2 = vld [vmem:[%s226_s20 + $0x18] sm:$0x3f]  ;;  %v243_v3 = vld [vmem:[%s226_s20] sm:$0x3f]  ;;  %s1804_s28 = scalar_lea.vmem %s1890_s3, %s1404_s17 }
  0x12   : > { %1349 = vmatprep.subr.msk.mxu0 %vm308_vm0, %v244_v1  ;;  %1363 = vmatprep.subr.msk.mxu1 %vm308_vm0, %v246_v2  ;;  %v245_v4 = vld [vmem:[%s226_s20 + $0x10] sm:$0x3f]  ;;  %v247_v5 = vld [vmem:[%s1511_s23] sm:$0xff]  ;;  %v248_v6 = vld [vmem:[%s1511_s23 + $0x8] sm:$0xff]  ;;  %1914 = vst [vmem:[#allocation7_spill] sm:$0xff] %v1645_v35 }
  0x13   : > { %1350 = vmatpush1.msk.msra.mxu0 %vm308_vm0, %v243_v3  ;;  %1364 = vmatpush1.msk.msra.mxu1 %vm308_vm0, %v245_v4  ;;  %v249_v7 = vld [vmem:[%s1511_s23 + $0x10] sm:$0xff]  ;;  %v250_v8 = vld [vmem:[%s1511_s23 + $0x18] sm:$0xff]  ;;  %v251_v9 = vld [vmem:[%s1511_s23 + $0x20] sm:$0xff]  ;;  %1915 = vst [vmem:[#allocation8_spill] sm:$0xff] %v1660_v40 }
  0x14   : > { %1351 = vmatmul.mubr.msk.f32.vlgmr.msra.gmra.mxu0 %vm271_vm1, %v247_v5  ;;  %1365 = vmatmul.mubr.msk.f32.vlgmr.msra.gmra.mxu1 %vm271_vm1, %v247_v5  ;;  %v252_v10 = vld [vmem:[%s1511_s23 + $0x28] sm:$0xff]  ;;  %v253_v11 = vld [vmem:[%s1511_s23 + $0x30] sm:$0xff]  ;;  %v254_v12 = vld [vmem:[%s1511_s23 + $0x38] sm:$0xff]  ;;  %1916 = vst [vmem:[#allocation9_spill] sm:$0xff] %v1665_v41 }
  0x15   : > { %391 = vmatprep.mubr.f32.mxu0 %v1891_v0  ;;  %528 = vmatprep.mubr.f32.mxu1 %v1891_v0  ;;  %v255_v13 = vld [vmem:[%s1511_s23 + $0x40] sm:$0xff]  ;;  %v256_v14 = vld [vmem:[%s1511_s23 + $0x48] sm:$0xff]  ;;  %v257_v15 = vld [vmem:[%s1511_s23 + $0x50] sm:$0xff] }
  0x16   : > { %v258_v16 = vld [vmem:[%s1511_s23 + $0x58] sm:$0xff]  ;;  %650 = vperm.xlu0 %1431, %v1588_v20   ;;  %660 = vperm.xlu1 %1432, %v1593_v21  }
  0x18   : > { %1352 = vmatmul.mubr.msk.f32.gmra.mxu0 %vm271_vm1, %v248_v6  ;;  %1366 = vmatmul.mubr.msk.f32.gmra.mxu1 %vm271_vm1, %v248_v6 }
  0x19   : > { %397 = vmatprep.mubr.f32.mxu0 %v1891_v0  ;;  %534 = vmatprep.mubr.f32.mxu1 %v1891_v0 }
  0x1a   : > { %665 = vperm.xlu0 %1431, %v1600_v22   ;;  %670 = vperm.xlu1 %1432, %v1605_v23  }
  0x1c   : > { %1353 = vmatmul.mubr.msk.f32.gmra.mxu0 %vm271_vm1, %v249_v7  ;;  %1367 = vmatmul.mubr.msk.f32.gmra.mxu1 %vm271_vm1, %v249_v7 }
  0x1d   : > { %403 = vmatprep.mubr.f32.mxu0 %v1891_v0  ;;  %540 = vmatprep.mubr.f32.mxu1 %v1891_v0 }
  0x1e   : > { %675 = vperm.xlu0 %1431, %v1620_v28   ;;  %680 = vperm.xlu1 %1432, %v1625_v29  }
  0x20   : > { %1354 = vmatmul.mubr.msk.f32.gmra.mxu0 %vm271_vm1, %v250_v8  ;;  %1368 = vmatmul.mubr.msk.f32.gmra.mxu1 %vm271_vm1, %v250_v8 }
  0x21   : > { %409 = vmatprep.mubr.f32.mxu0 %v1891_v0  ;;  %546 = vmatprep.mubr.f32.mxu1 %v1891_v0 }
  0x22   : > { %685 = vperm.xlu0 %1431, %v1640_v34   ;;  %690 = vperm.xlu1 %1432, %v1645_v35  }
  0x24   : > { %1355 = vmatmul.mubr.msk.f32.gmra.mxu0 %vm271_vm1, %v251_v9  ;;  %1369 = vmatmul.mubr.msk.f32.gmra.mxu1 %vm271_vm1, %v251_v9 }
  0x25   : > { %415 = vmatprep.mubr.f32.mxu0 %v1891_v0  ;;  %552 = vmatprep.mubr.f32.mxu1 %v1891_v0 }
  0x26   : > { %695 = vperm.xlu0 %1431, %v1660_v40   ;;  %700 = vperm.xlu1 %1432, %v1665_v41  }
  0x28   : > { %1356 = vmatmul.mubr.msk.f32.gmra.mxu0 %vm271_vm1, %v252_v10  ;;  %1370 = vmatmul.mubr.msk.f32.gmra.mxu1 %vm271_vm1, %v252_v10 }
  0x29   : > { %421 = vmatprep.mubr.f32.mxu0 %v1891_v0  ;;  %558 = vmatprep.mubr.f32.mxu1 %v1891_v0 }
  0x2c   : > { %1357 = vmatmul.mubr.msk.f32.gmra.mxu0 %vm271_vm1, %v253_v11  ;;  %1371 = vmatmul.mubr.msk.f32.gmra.mxu1 %vm271_vm1, %v253_v11 }
  0x2d   : > { %427 = vmatprep.mubr.f32.mxu0 %v1891_v0  ;;  %564 = vmatprep.mubr.f32.mxu1 %v1891_v0 }
  0x30   : > { %1358 = vmatmul.mubr.msk.f32.gmra.mxu0 %vm271_vm1, %v254_v12  ;;  %1372 = vmatmul.mubr.msk.f32.gmra.mxu1 %vm271_vm1, %v254_v12 }
  0x31   : > { %433 = vmatprep.mubr.f32.mxu0 %v1891_v0  ;;  %570 = vmatprep.mubr.f32.mxu1 %v1891_v0 }
  0x34   : > { %1359 = vmatmul.mubr.msk.f32.gmra.mxu0 %vm271_vm1, %v255_v13  ;;  %1373 = vmatmul.mubr.msk.f32.gmra.mxu1 %vm271_vm1, %v255_v13 }
  0x35   : > { %439 = vmatprep.mubr.f32.mxu0 %v1891_v0  ;;  %576 = vmatprep.mubr.f32.mxu1 %v1891_v0 }
  0x38   : > { %1360 = vmatmul.mubr.msk.f32.gmra.mxu0 %vm271_vm1, %v256_v14  ;;  %1374 = vmatmul.mubr.msk.f32.gmra.mxu1 %vm271_vm1, %v256_v14 }
  0x39   : > { %445 = vmatprep.mubr.f32.mxu0 %v1891_v0  ;;  %582 = vmatprep.mubr.f32.mxu1 %v1891_v0 }
  0x3c   : > { %1361 = vmatmul.mubr.msk.f32.gmra.mxu0 %vm271_vm1, %v257_v15  ;;  %1375 = vmatmul.mubr.msk.f32.gmra.mxu1 %vm271_vm1, %v257_v15 }
  0x3d   : > { %451 = vmatprep.mubr.f32.mxu0 %v1891_v0  ;;  %588 = vmatprep.mubr.f32.mxu1 %v1891_v0 }
  0x40   : > { %1362 = vmatmul.mubr.msk.f32.gmra.mxu0 %vm271_vm1, %v258_v16  ;;  %1376 = vmatmul.mubr.msk.f32.gmra.mxu1 %vm271_vm1, %v258_v16 }
  0x41   : > { %792 = vmatprep.mubr.f32.mxu0 %v1891_v0  ;;  %929 = vmatprep.mubr.f32.mxu1 %v1891_v0 }
  0xd4   : > { %v1609_v24 = vpop.f32.mrf.mxu0  ;;  %v1611_v25 = vpop.f32.mrf.mxu1 }
  0xd6   : > { %v1613_v26 = vpop.f32.mrf.mxu0  ;;  %v1615_v27 = vpop.f32.mrf.mxu1 }
  0xd8   : > { %v1629_v30 = vpop.f32.mrf.mxu0  ;;  %v1631_v31 = vpop.f32.mrf.mxu1 }
  0xda   : > { %v1633_v32 = vpop.f32.mrf.mxu0  ;;  %v1635_v33 = vpop.f32.mrf.mxu1 }
  0xdc   : > { %v1649_v36 = vpop.f32.mrf.mxu0  ;;  %v1651_v37 = vpop.f32.mrf.mxu1 }
  0xde   : > { %v1653_v38 = vpop.f32.mrf.mxu0  ;;  %v1655_v39 = vpop.f32.mrf.mxu1 }
  0xe0   : > { %v1669_v42 = vpop.f32.mrf.mxu0  ;;  %v1671_v43 = vpop.f32.mrf.mxu1 }
  0xe2   : > { %v1673_v44 = vpop.f32.mrf.mxu0  ;;  %v1675_v45 = vpop.f32.mrf.mxu1 }
  0xe4   : > { %v1677_v46 = vpop.f32.mrf.mxu0  ;;  %v1679_v47 = vpop.f32.mrf.mxu1 }
  0xe6   : > { %v1681_v48 = vpop.f32.mrf.mxu0  ;;  %v1683_v49 = vpop.f32.mrf.mxu1 }
  0xe8   : > { %v1685_v50 = vpop.f32.mrf.mxu0  ;;  %v1687_v51 = vpop.f32.mrf.mxu1 }
  0xea   : > { %v1689_v52 = vpop.f32.mrf.mxu0  ;;  %v1691_v53 = vpop.f32.mrf.mxu1 }
  0xec   : > { %v1693_v54 = vpop.f32.mrf.mxu0  ;;  %v1695_v55 = vpop.f32.mrf.mxu1 }
  0xee   : > { %v1697_v56 = vpop.f32.mrf.mxu0  ;;  %v1699_v57 = vpop.f32.mrf.mxu1 }
  0xf0   : > { %v429_v58 = vpop.f32.mrf.mxu0  ;;  %v566_v59 = vpop.f32.mrf.mxu1 }
  0xf2   : > { %v431_v60 = vpop.f32.mrf.mxu0  ;;  %v568_v61 = vpop.f32.mrf.mxu1 }
  0xf4   : > { %v435_v62 = vpop.f32.mrf.mxu0  ;;  %v572_v63 = vpop.f32.mrf.mxu1 }
  0xf6   : > { %v437_v1 = vpop.f32.mrf.mxu0  ;;  %v574_v2 = vpop.f32.mrf.mxu1 }
  0xf8   : > { %v441_v3 = vpop.f32.mrf.mxu0  ;;  %v578_v4 = vpop.f32.mrf.mxu1 }
  0xf9   : > { %v631_v23 = vmax.f32 %v441_v3, 0.0  ;;  %v633_v22 = vmax.f32 %v578_v4, 0.0 }
  0xfa   : > { %v443_v5 = vpop.f32.mrf.mxu0  ;;  %v580_v6 = vpop.f32.mrf.mxu1 }
  0xfb   : > { %v632_v29 = vmax.f32 %v443_v5, 0.0  ;;  %v634_v28 = vmax.f32 %v580_v6, 0.0  ;;  %v625_v5 = vmax.f32 %v566_v59, 0.0 }
  0xfc   : > { %v447_v7 = vpop.f32.mrf.mxu0  ;;  %v584_v8 = vpop.f32.mrf.mxu1 }
  0xfd   : > { %v635_v35 = vmax.f32 %v447_v7, 0.0  ;;  %v637_v34 = vmax.f32 %v584_v8, 0.0  ;;  %v624_v7 = vmax.f32 %v431_v60, 0.0  ;;  %v626_v8 = vmax.f32 %v568_v61, 0.0 }
  0xfe   : > { %v449_v9 = vpop.f32.mrf.mxu0  ;;  %v586_v10 = vpop.f32.mrf.mxu1 }
  0xff   : > { %v636_v41 = vmax.f32 %v449_v9, 0.0  ;;  %v638_v40 = vmax.f32 %v586_v10, 0.0  ;;  %v627_v9 = vmax.f32 %v435_v62, 0.0  ;;  %v629_v10 = vmax.f32 %v572_v63, 0.0 }
 0x100   : > { %v453_v11 = vpop.f32.mrf.mxu0  ;;  %v590_v12 = vpop.f32.mrf.mxu1 }
 0x101   : > { %v641_v13 = vmax.f32 %v590_v12, 0.0  ;;  %v639_v0 = vmax.f32 %v453_v11, 0.0  ;;  %v628_v12 = vmax.f32 %v437_v1, 0.0 }
 0x102   : > { %v455_v14 = vpop.f32.mrf.mxu0  ;;  %v592_v15 = vpop.f32.mrf.mxu1 }
 0x103   : > { %v640_v16 = vmax.f32 %v455_v14, 0.0  ;;  %v642_v19 = vmax.f32 %v592_v15, 0.0  ;;  %v630_v14 = vmax.f32 %v574_v2, 0.0 }
 0x105   : > { %736 = vmatprep.subr.mxu0 %v640_v16  ;;  %873 = vmatprep.subr.mxu1 %v642_v19 }
 0x106   : > { %737 = vmatpush1.msra.mxu0 %v639_v0  ;;  %874 = vmatpush1.msra.mxu1 %v641_v13  ;;  %v623_v0 = vmax.f32 %v429_v58, 0.0 }
 0x107   : > { %738 = vmatprep.subr.mxu0 %v636_v41  ;;  %875 = vmatprep.subr.mxu1 %v638_v40  ;;  %v620_v40 = vmax.f32 %v1697_v56, 0.0  ;;  %v617_v41 = vmax.f32 %v1687_v51, 0.0  ;;  %v612_v56 = vmax.f32 %v1681_v48, 0.0  ;;  %v607_v51 = vmax.f32 %v1669_v42, 0.0 }
 0x108   : > { %739 = vmatpush1.msra.mxu0 %v635_v35  ;;  %876 = vmatpush1.msra.mxu1 %v637_v34  ;;  %v622_v34 = vmax.f32 %v1699_v57, 0.0  ;;  %v615_v35 = vmax.f32 %v1685_v50, 0.0  ;;  %v610_v50 = vmax.f32 %v1675_v45, 0.0  ;;  %v609_v48 = vmax.f32 %v1671_v43, 0.0 }
 0x109   : > { %740 = vmatprep.subr.mxu0 %v632_v29  ;;  %877 = vmatprep.subr.mxu1 %v634_v28  ;;  %v619_v28 = vmax.f32 %v1693_v54, 0.0  ;;  %v621_v29 = vmax.f32 %v1695_v55, 0.0  ;;  %v614_v54 = vmax.f32 %v1683_v49, 0.0  ;;  %v611_v55 = vmax.f32 %v1677_v46, 0.0 }
 0x10a   : > { %741 = vmatpush1.msra.mxu0 %v631_v23  ;;  %878 = vmatpush1.msra.mxu1 %v633_v22  ;;  %v616_v22 = vmax.f32 %v1689_v52, 0.0  ;;  %v618_v23 = vmax.f32 %v1691_v53, 0.0  ;;  %v613_v52 = vmax.f32 %v1679_v47, 0.0  ;;  %v608_v53 = vmax.f32 %v1673_v44, 0.0 }
 0x10b   : > { %742 = vmatprep.subr.mxu0 %v628_v12  ;;  %879 = vmatprep.subr.mxu1 %v630_v14  ;;  %v604_v49 = vmax.f32 %v1653_v38, 0.0  ;;  %v606_v46 = vmax.f32 %v1655_v39, 0.0  ;;  %v603_v47 = vmax.f32 %v1649_v36, 0.0  ;;  %v605_v44 = vmax.f32 %v1651_v37, 0.0  ;;  %v656_v12 = vpop.permute.xlu1 %655 }
 0x10c   : > { %743 = vmatpush1.msra.mxu0 %v627_v9  ;;  %880 = vmatpush1.msra.mxu1 %v629_v10  ;;  %v600_v45 = vmax.f32 %v1633_v32, 0.0  ;;  %v602_v42 = vmax.f32 %v1635_v33, 0.0  ;;  %v599_v43 = vmax.f32 %v1629_v30, 0.0  ;;  %v601_v38 = vmax.f32 %v1631_v31, 0.0  ;;  %v1925_v30 = vld [vmem:[#allocation9_spill] sm:$0xff]  ;;  %v646_v31 = vpop.permute.xlu0 %645 }
 0x10d   : > { %744 = vmatprep.subr.mxu0 %v624_v7  ;;  %881 = vmatprep.subr.mxu1 %v626_v8  ;;  %v596_v39 = vmax.f32 %v1613_v26, 0.0  ;;  %v598_v36 = vmax.f32 %v1615_v27, 0.0  ;;  %v595_v37 = vmax.f32 %v1609_v24, 0.0  ;;  %v597_v32 = vmax.f32 %v1611_v25, 0.0  ;;  %v1922_v24 = vld [vmem:[#allocation6_spill] sm:$0xff]  ;;  %v1923_v25 = vld [vmem:[#allocation7_spill] sm:$0xff] }
 0x10e   : > { %745 = vmatpush1.msra.mxu0 %v623_v0  ;;  %882 = vmatpush1.msra.mxu1 %v625_v5  ;;  %v1917_v26 = vmov 0.0   ;;  %v1924_v27 = vld [vmem:[#allocation8_spill] sm:$0xff] }
 0x10f   : > { %746 = vmatprep.subr.mxu0 %v620_v40  ;;  %883 = vmatprep.subr.mxu1 %v622_v34  ;;  %1187 = vst.msk [vmem:[%s1804_s28] sm:$0xff] %vm1186_vm3, %v1917_v26  ;;  %1188 = vst.msk [vmem:[%s1804_s28 + $0x8] sm:$0xff] %vm1186_vm3, %v1917_v26 }
 0x110   : > { %747 = vmatpush1.msra.mxu0 %v619_v28  ;;  %884 = vmatpush1.msra.mxu1 %v621_v29  ;;  %1189 = vst.msk [vmem:[%s1804_s28 + $0x10] sm:$0xff] %vm1186_vm3, %v1917_v26  ;;  %1190 = vst.msk [vmem:[%s1804_s28 + $0x18] sm:$0xff] %vm1186_vm3, %v1917_v26  ;;  %v651_v60 = vpop.permute.xlu0 %650 }
 0x111   : > { %748 = vmatprep.subr.mxu0 %v616_v22  ;;  %885 = vmatprep.subr.mxu1 %v618_v23  ;;  %1191 = vst.msk [vmem:[%s1804_s28 + $0x20] sm:$0xff] %vm1186_vm3, %v1917_v26  ;;  %1192 = vst.msk [vmem:[%s1804_s28 + $0x28] sm:$0xff] %vm1186_vm3, %v1917_v26 }
 0x112   : > { %749 = vmatpush1.msra.mxu0 %v615_v35  ;;  %886 = vmatpush1.msra.mxu1 %v617_v41  ;;  %1193 = vst.msk [vmem:[%s1804_s28 + $0x30] sm:$0xff] %vm1186_vm3, %v1917_v26  ;;  %1194 = vst.msk [vmem:[%s1804_s28 + $0x38] sm:$0xff] %vm1186_vm3, %v1917_v26 }
 0x113   : > { %750 = vmatprep.subr.mxu0 %v612_v56  ;;  %887 = vmatprep.subr.mxu1 %v614_v54  ;;  %1195 = vst.msk [vmem:[%s1804_s28 + $0x40] sm:$0xff] %vm1186_vm3, %v1917_v26  ;;  %1196 = vst.msk [vmem:[%s1804_s28 + $0x48] sm:$0xff] %vm1186_vm3, %v1917_v26 }
 0x114   : > { %751 = vmatpush1.msra.mxu0 %v611_v55  ;;  %888 = vmatpush1.msra.mxu1 %v613_v52  ;;  %1197 = vst.msk [vmem:[%s1804_s28 + $0x50] sm:$0xff] %vm1186_vm3, %v1917_v26  ;;  %1198 = vst.msk [vmem:[%s1804_s28 + $0x58] sm:$0xff] %vm1186_vm3, %v1917_v26 }
 0x115   : > { %752 = vmatprep.subr.mxu0 %v608_v53  ;;  %889 = vmatprep.subr.mxu1 %v610_v50 }
 0x116   : > { %753 = vmatpush1.msra.mxu0 %v607_v51  ;;  %890 = vmatpush1.msra.mxu1 %v609_v48 }
 0x117   : > { %754 = vmatprep.subr.mxu0 %v604_v49  ;;  %891 = vmatprep.subr.mxu1 %v606_v46  ;;  %v661_v49 = vpop.permute.xlu1 %660 }
 0x118   : > { %755 = vmatpush1.msra.mxu0 %v603_v47  ;;  %892 = vmatpush1.msra.mxu1 %v605_v44 }
 0x119   : > { %756 = vmatprep.subr.mxu0 %v600_v45  ;;  %893 = vmatprep.subr.mxu1 %v602_v42 }
 0x11a   : > { %757 = vmatpush1.msra.mxu0 %v599_v43  ;;  %894 = vmatpush1.msra.mxu1 %v601_v38 }
 0x11b   : > { %758 = vmatprep.subr.mxu0 %v596_v39  ;;  %895 = vmatprep.subr.mxu1 %v598_v36  ;;  %v666_v39 = vpop.permute.xlu0 %665 }
 0x11c   : > { %759 = vmatpush1.msra.mxu0 %v595_v37  ;;  %896 = vmatpush1.msra.mxu1 %v597_v32 }
 0x11d   : > { %1377 = vmatmul.mubr.msk.f32.vlgmr.msra.gmra.mxu0 %vm703_vm2, %v1576_v17  ;;  %1389 = vmatmul.mubr.msk.f32.vlgmr.msra.gmra.mxu1 %vm703_vm2, %v1576_v17  ;;  %v1918_v17 = vld [vmem:[#allocation2_spill] sm:$0xff] }
 0x11e   : > { %798 = vmatprep.mubr.f32.mxu0 %v1917_v26  ;;  %935 = vmatprep.mubr.f32.mxu1 %v1917_v26 }
 0x121   : > { %1378 = vmatmul.mubr.msk.f32.gmra.mxu0 %vm703_vm2, %v1588_v20  ;;  %1390 = vmatmul.mubr.msk.f32.gmra.mxu1 %vm703_vm2, %v1588_v20  ;;  %v1920_v20 = vld [vmem:[#allocation4_spill] sm:$0xff] }
 0x122   : > { %804 = vmatprep.mubr.f32.mxu0 %v1917_v26  ;;  %941 = vmatprep.mubr.f32.mxu1 %v1917_v26 }
 0x125   : > { %1379 = vmatmul.mubr.msk.f32.gmra.mxu0 %vm703_vm2, %v1581_v18  ;;  %1391 = vmatmul.mubr.msk.f32.gmra.mxu1 %vm703_vm2, %v1581_v18  ;;  %v1919_v18 = vld [vmem:[#allocation3_spill] sm:$0xff] }
 0x126   : > { %810 = vmatprep.mubr.f32.mxu0 %v1917_v26  ;;  %947 = vmatprep.mubr.f32.mxu1 %v1917_v26 }
 0x129   : > { %1380 = vmatmul.mubr.msk.f32.gmra.mxu0 %vm703_vm2, %v1593_v21  ;;  %1392 = vmatmul.mubr.msk.f32.gmra.mxu1 %vm703_vm2, %v1593_v21  ;;  %v1921_v21 = vld [vmem:[#allocation5_spill] sm:$0xff] }
 0x12a   : > { %816 = vmatprep.mubr.f32.mxu0 %v1917_v26  ;;  %953 = vmatprep.mubr.f32.mxu1 %v1917_v26 }
 0x12d   : > { %1381 = vmatmul.mubr.msk.f32.gmra.mxu0 %vm703_vm2, %v1918_v17  ;;  %1393 = vmatmul.mubr.msk.f32.gmra.mxu1 %vm703_vm2, %v1918_v17 }
 0x12e   : > { %822 = vmatprep.mubr.f32.mxu0 %v1917_v26  ;;  %959 = vmatprep.mubr.f32.mxu1 %v1917_v26 }
 0x131   : > { %1382 = vmatmul.mubr.msk.f32.gmra.mxu0 %vm703_vm2, %v1919_v18  ;;  %1394 = vmatmul.mubr.msk.f32.gmra.mxu1 %vm703_vm2, %v1919_v18 }
 0x132   : > { %828 = vmatprep.mubr.f32.mxu0 %v1917_v26  ;;  %965 = vmatprep.mubr.f32.mxu1 %v1917_v26 }
 0x135   : > { %1383 = vmatmul.mubr.msk.f32.gmra.mxu0 %vm703_vm2, %v1920_v20  ;;  %1395 = vmatmul.mubr.msk.f32.gmra.mxu1 %vm703_vm2, %v1920_v20 }
 0x136   : > { %834 = vmatprep.mubr.f32.mxu0 %v1917_v26  ;;  %971 = vmatprep.mubr.f32.mxu1 %v1917_v26 }
 0x139   : > { %1384 = vmatmul.mubr.msk.f32.gmra.mxu0 %vm703_vm2, %v1921_v21  ;;  %1396 = vmatmul.mubr.msk.f32.gmra.mxu1 %vm703_vm2, %v1921_v21 }
 0x13a   : > { %840 = vmatprep.mubr.f32.mxu0 %v1917_v26  ;;  %977 = vmatprep.mubr.f32.mxu1 %v1917_v26 }
 0x13d   : > { %1385 = vmatmul.mubr.msk.f32.gmra.mxu0 %vm703_vm2, %v1922_v24  ;;  %1397 = vmatmul.mubr.msk.f32.gmra.mxu1 %vm703_vm2, %v1922_v24 }
 0x13e   : > { %846 = vmatprep.mubr.f32.mxu0 %v1917_v26  ;;  %983 = vmatprep.mubr.f32.mxu1 %v1917_v26 }
 0x141   : > { %1386 = vmatmul.mubr.msk.f32.gmra.mxu0 %vm703_vm2, %v1923_v25  ;;  %1398 = vmatmul.mubr.msk.f32.gmra.mxu1 %vm703_vm2, %v1923_v25 }
 0x142   : > { %852 = vmatprep.mubr.f32.mxu0 %v1917_v26  ;;  %989 = vmatprep.mubr.f32.mxu1 %v1917_v26 }
 0x145   : > { %1387 = vmatmul.mubr.msk.f32.gmra.mxu0 %vm703_vm2, %v1924_v27  ;;  %1399 = vmatmul.mubr.msk.f32.gmra.mxu1 %vm703_vm2, %v1924_v27 }
 0x146   : > { %858 = vmatprep.mubr.f32.mxu0 %v1917_v26  ;;  %995 = vmatprep.mubr.f32.mxu1 %v1917_v26 }
 0x149   : > { %1388 = vmatmul.mubr.msk.f32.gmra.mxu0 %vm703_vm2, %v1925_v30  ;;  %1400 = vmatmul.mubr.msk.f32.gmra.mxu1 %vm703_vm2, %v1925_v30 }
 0x1dd   : > { %v794_v33 = vpop.f32.mrf.mxu0  ;;  %v931_v57 = vpop.f32.mrf.mxu1 }
 0x1de   : > { %v795_v58 = vadd.f32 %v794_v33, %v646_v31  ;;  %v932_v59 = vadd.f32 %v931_v57, %v646_v31 }
 0x1df   : > { %v796_v61 = vpop.f32.mrf.mxu0  ;;  %v933_v62 = vpop.f32.mrf.mxu1 }
 0x1e0   : > { %v797_v63 = vadd.f32 %v796_v61, %v646_v31  ;;  %v1002_v3 = vmax.f32 %v795_v58, 0.0  ;;  %v934_v4 = vadd.f32 %v933_v62, %v646_v31  ;;  %v1004_v15 = vmax.f32 %v932_v59, 0.0 }
 0x1e1   : > { %v800_v1 = vpop.f32.mrf.mxu0  ;;  %v937_v2 = vpop.f32.mrf.mxu1 }
 0x1e2   : > { %v1003_v6 = vmax.f32 %v797_v63, 0.0  ;;  %v801_v11 = vadd.f32 %v800_v1, %v651_v60  ;;  %v938_v13 = vadd.f32 %v937_v2, %v651_v60  ;;  %v1005_v0 = vmax.f32 %v934_v4, 0.0  ;;  %v671_v1 = vpop.permute.xlu1 %670 }
 0x1e3   : > { %v802_v16 = vpop.f32.mrf.mxu0  ;;  %v939_v19 = vpop.f32.mrf.mxu1 }
 0x1e4   : > { %v803_v14 = vadd.f32 %v802_v16, %v651_v60  ;;  %v1122_v9 = vadd.f32 %v1003_v6, %v1002_v3  ;;  %v1006_v8 = vmax.f32 %v801_v11, 0.0  ;;  %v940_v5 = vadd.f32 %v939_v19, %v651_v60 }
 0x1e5   : > { %v806_v10 = vpop.f32.mrf.mxu0  ;;  %v943_v7 = vpop.f32.mrf.mxu1  ;;  %v1008_v40 = vmax.f32 %v938_v13, 0.0 }
 0x1e6   : > { %v807_v34 = vadd.f32 %v806_v10, %v656_v12  ;;  %v944_v28 = vadd.f32 %v943_v7, %v656_v12  ;;  %v1007_v29 = vmax.f32 %v803_v14, 0.0  ;;  %v1123_v22 = vadd.f32 %v1122_v9, %v1004_v15 }
 0x1e7   : > { %v808_v23 = vpop.f32.mrf.mxu0  ;;  %v945_v35 = vpop.f32.mrf.mxu1  ;;  %v1009_v53 = vmax.f32 %v940_v5, 0.0 }
 0x1e8   : > { %v809_v41 = vadd.f32 %v808_v23, %v656_v12  ;;  %v1124_v56 = vadd.f32 %v1123_v22, %v1005_v0  ;;  %v1127_v54 = vadd.f32 %v1007_v29, %v1006_v8  ;;  %v946_v50 = vadd.f32 %v945_v35, %v656_v12  ;;  %v676_v12 = vpop.permute.xlu0 %675 }
 0x1e9   : > { %v812_v55 = vpop.f32.mrf.mxu0  ;;  %v949_v52 = vpop.f32.mrf.mxu1  ;;  %v1010_v51 = vmax.f32 %v807_v34, 0.0  ;;  %v1012_v47 = vmax.f32 %v944_v28, 0.0 }
 0x1ea   : > { %v1011_v48 = vmax.f32 %v809_v41, 0.0  ;;  %1125 = vadd.xlane.f32.xlu0 %v1124_v56  ;;  %v1128_v46 = vadd.f32 %v1127_v54, %v1008_v40  ;;  %v813_v42 = vadd.f32 %v812_v55, %v661_v49  ;;  %v950_v43 = vadd.f32 %v949_v52, %v661_v49 }
 0x1eb   : > { %v814_v44 = vpop.f32.mrf.mxu0  ;;  %v951_v45 = vpop.f32.mrf.mxu1  ;;  %v1013_v17 = vmax.f32 %v946_v50, 0.0 }
 0x1ec   : > { %v815_v38 = vadd.f32 %v814_v44, %v661_v49  ;;  %v1129_v36 = vadd.f32 %v1128_v46, %v1009_v53  ;;  %v1132_v37 = vadd.f32 %v1011_v48, %v1010_v51  ;;  %v1014_v30 = vmax.f32 %v813_v42, 0.0  ;;  %v681_v51 = vpop.permute.xlu1 %680 }
 0x1ed   : > { %v818_v32 = vpop.f32.mrf.mxu0  ;;  %v955_v26 = vpop.f32.mrf.mxu1  ;;  %v952_v31 = vadd.f32 %v951_v45, %v661_v49  ;;  %v1016_v33 = vmax.f32 %v950_v43, 0.0 }
 0x1ee   : > { %v1015_v18 = vmax.f32 %v815_v38, 0.0  ;;  %v819_v20 = vadd.f32 %v818_v32, %v666_v39  ;;  %v956_v21 = vadd.f32 %v955_v26, %v666_v39  ;;  %1130 = vadd.xlane.f32.xlu1 %v1129_v36  ;;  %v1133_v24 = vadd.f32 %v1132_v37, %v1012_v47  ;;  %v686_v43 = vpop.permute.xlu0 %685 }
 0x1ef   : > { %v820_v25 = vpop.f32.mrf.mxu0  ;;  %v957_v27 = vpop.f32.mrf.mxu1  ;;  %v1017_v15 = vmax.f32 %v952_v31, 0.0 }
 0x1f0   : > { %v821_v57 = vadd.f32 %v820_v25, %v666_v39  ;;  %v1134_v58 = vadd.f32 %v1133_v24, %v1013_v17  ;;  %v1137_v61 = vadd.f32 %v1015_v18, %v1014_v30  ;;  %v1018_v62 = vmax.f32 %v819_v20, 0.0 }
 0x1f1   : > { %v824_v59 = vpop.f32.mrf.mxu0  ;;  %v961_v60 = vpop.f32.mrf.mxu1  ;;  %v958_v2 = vadd.f32 %v957_v27, %v666_v39  ;;  %v1020_v3 = vmax.f32 %v956_v21, 0.0 }
 0x1f2   : > { %v1019_v63 = vmax.f32 %v821_v57, 0.0  ;;  %1135 = vadd.xlane.f32.xlu0 %v1134_v58  ;;  %v825_v11 = vadd.f32 %v824_v59, %v671_v1  ;;  %v962_v13 = vadd.f32 %v961_v60, %v671_v1  ;;  %v1138_v16 = vadd.f32 %v1137_v61, %v1016_v33 }
 0x1f3   : > { %v826_v4 = vpop.f32.mrf.mxu0  ;;  %v963_v6 = vpop.f32.mrf.mxu1  ;;  %v1021_v5 = vmax.f32 %v958_v2, 0.0 }
 0x1f4   : > { %v827_v19 = vadd.f32 %v826_v4, %v671_v1  ;;  %v1142_v14 = vadd.f32 %v1019_v63, %v1018_v62  ;;  %v1139_v7 = vadd.f32 %v1138_v16, %v1017_v15  ;;  %v1022_v29 = vmax.f32 %v825_v11, 0.0  ;;  %v696_v16 = vpop.permute.xlu0 %695 }
 0x1f5   : > { %v830_v9 = vpop.f32.mrf.mxu0  ;;  %v967_v10 = vpop.f32.mrf.mxu1  ;;  %v964_v22 = vadd.f32 %v963_v6, %v671_v1  ;;  %v1024_v23 = vmax.f32 %v962_v13, 0.0 }
 0x1f6   : > { %v1023_v8 = vmax.f32 %v827_v19, 0.0  ;;  %v831_v0 = vadd.f32 %v830_v9, %v676_v12  ;;  %v1143_v40 = vadd.f32 %v1142_v14, %v1020_v3  ;;  %1140 = vadd.xlane.f32.xlu0 %v1139_v7  ;;  %v968_v41 = vadd.f32 %v967_v10, %v676_v12  ;;  %v691_v1 = vpop.permute.xlu1 %690 }
 0x1f7   : > { %v832_v34 = vpop.f32.mrf.mxu0  ;;  %v969_v28 = vpop.f32.mrf.mxu1  ;;  %v1025_v44 = vmax.f32 %v964_v22, 0.0 }
 0x1f8   : > { %v833_v35 = vadd.f32 %v832_v34, %v676_v12  ;;  %v1144_v56 = vadd.f32 %v1143_v40, %v1021_v5  ;;  %v1147_v52 = vadd.f32 %v1023_v8, %v1022_v29  ;;  %v1026_v53 = vmax.f32 %v831_v0, 0.0 }
 0x1f9   : > { %v836_v54 = vpop.f32.mrf.mxu0  ;;  %v973_v55 = vpop.f32.mrf.mxu1  ;;  %v970_v48 = vadd.f32 %v969_v28, %v676_v12  ;;  %v1028_v38 = vmax.f32 %v968_v41, 0.0 }
 0x1fa   : > { %v1027_v50 = vmax.f32 %v833_v35, 0.0  ;;  %1145 = vadd.xlane.f32.xlu1 %v1144_v56  ;;  %v837_v47 = vadd.f32 %v836_v54, %v681_v51  ;;  %v1148_v45 = vadd.f32 %v1147_v52, %v1024_v23  ;;  %v974_v32 = vadd.f32 %v973_v55, %v681_v51  ;;  %v701_v41 = vpop.permute.xlu1 %700 }
 0x1fb   : > { %v838_v49 = vpop.f32.mrf.mxu0  ;;  %v975_v46 = vpop.f32.mrf.mxu1  ;;  %v1029_v20 = vmax.f32 %v970_v48, 0.0 }
 0x1fc   : > { %v839_v42 = vadd.f32 %v838_v49, %v681_v51  ;;  %v1152_v39 = vadd.f32 %v1027_v50, %v1026_v53  ;;  %v1149_v26 = vadd.f32 %v1148_v45, %v1025_v44  ;;  %v1030_v25 = vmax.f32 %v837_v47, 0.0 }
 0x1fd   : > { %v842_v36 = vpop.f32.mrf.mxu0  ;;  %v979_v37 = vpop.f32.mrf.mxu1  ;;  %v976_v30 = vadd.f32 %v975_v46, %v681_v51  ;;  %v1032_v60 = vmax.f32 %v974_v32, 0.0 }
 0x1fe   : > { %v1031_v17 = vmax.f32 %v839_v42, 0.0  ;;  %v843_v18 = vadd.f32 %v842_v36, %v686_v43  ;;  %v1153_v21 = vadd.f32 %v1152_v39, %v1028_v38  ;;  %1150 = vadd.xlane.f32.xlu0 %v1149_v26  ;;  %v980_v58 = vadd.f32 %v979_v37, %v686_v43 }
 0x1ff   : > { %v844_v24 = vpop.f32.mrf.mxu0  ;;  %v981_v27 = vpop.f32.mrf.mxu1  ;;  %v1033_v11 = vmax.f32 %v976_v30, 0.0 }
 0x200   : > { %v845_v31 = vadd.f32 %v844_v24, %v686_v43  ;;  %v1154_v33 = vadd.f32 %v1153_v21, %v1029_v20  ;;  %v1157_v61 = vadd.f32 %v1031_v17, %v1030_v25  ;;  %v1034_v62 = vmax.f32 %v843_v18, 0.0 }
 0x201   : > { %v848_v57 = vpop.f32.mrf.mxu0  ;;  %v985_v59 = vpop.f32.mrf.mxu1  ;;  %v982_v3 = vadd.f32 %v981_v27, %v686_v43  ;;  %v1036_v10 = vmax.f32 %v980_v58, 0.0  ;;  %v1200_v58 = vld [vmem:[%s1804_s28 + $0x8] sm:$0xff] }
 0x202   : > { %v1035_v63 = vmax.f32 %v845_v31, 0.0  ;;  %1155 = vadd.xlane.f32.xlu1 %v1154_v33  ;;  %v849_v4 = vadd.f32 %v848_v57, %v691_v1  ;;  %v1158_v13 = vadd.f32 %v1157_v61, %v1032_v60  ;;  %v986_v14 = vadd.f32 %v985_v59, %v691_v1  ;;  %v1199_v31 = vld [vmem:[%s1804_s28] sm:$0xff]  ;;  %v1201_v61 = vld [vmem:[%s1804_s28 + $0x10] sm:$0xff] }
 0x203   : > { %v850_v2 = vpop.f32.mrf.mxu0  ;;  %v987_v6 = vpop.f32.mrf.mxu1  ;;  %v1037_v5 = vmax.f32 %v982_v3, 0.0  ;;  %v1203_v3 = vld [vmem:[%s1804_s28 + $0x20] sm:$0xff] }
 0x204   : > { %v851_v15 = vadd.f32 %v850_v2, %v691_v1  ;;  %v1162_v19 = vadd.f32 %v1035_v63, %v1034_v62  ;;  %v1159_v7 = vadd.f32 %v1158_v13, %v1033_v11  ;;  %v1038_v40 = vmax.f32 %v849_v4, 0.0  ;;  %v1204_v13 = vld [vmem:[%s1804_s28 + $0x28] sm:$0xff] }
 0x205   : > { %v854_v12 = vpop.f32.mrf.mxu0  ;;  %v991_v9 = vpop.f32.mrf.mxu1  ;;  %v988_v28 = vadd.f32 %v987_v6, %v691_v1  ;;  %v1040_v53 = vmax.f32 %v986_v14, 0.0  ;;  %v1202_v1 = vld [vmem:[%s1804_s28 + $0x18] sm:$0xff] }
 0x206   : > { %v1039_v8 = vmax.f32 %v851_v15, 0.0  ;;  %v855_v0 = vadd.f32 %v854_v12, %v696_v16  ;;  %v1163_v22 = vadd.f32 %v1162_v19, %v1036_v10  ;;  %1160 = vadd.xlane.f32.xlu0 %v1159_v7  ;;  %v992_v35 = vadd.f32 %v991_v9, %v696_v16  ;;  %v1206_v9 = vld [vmem:[%s1804_s28 + $0x38] sm:$0xff] }
 0x207   : > { %v856_v34 = vpop.f32.mrf.mxu0  ;;  %v993_v29 = vpop.f32.mrf.mxu1  ;;  %v1041_v46 = vmax.f32 %v988_v28, 0.0  ;;  %v1209_v28 = vld [vmem:[%s1804_s28 + $0x50] sm:$0xff] }
 0x208   : > { %v857_v23 = vadd.f32 %v856_v34, %v696_v16  ;;  %v994_v54 = vadd.f32 %v993_v29, %v696_v16  ;;  %v1164_v52 = vadd.f32 %v1163_v22, %v1037_v5  ;;  %v1167_v50 = vadd.f32 %v1039_v8, %v1038_v40  ;;  %v1205_v16 = vld [vmem:[%s1804_s28 + $0x30] sm:$0xff]  ;;  %v1207_v8 = vld [vmem:[%s1804_s28 + $0x40] sm:$0xff]  ;;  %v1208_v40 = vld [vmem:[%s1804_s28 + $0x48] sm:$0xff] }
 0x209   : > { %v860_v56 = vpop.f32.mrf.mxu0  ;;  %v997_v55 = vpop.f32.mrf.mxu1  ;;  %v1042_v51 = vmax.f32 %v855_v0, 0.0  ;;  %v1044_v43 = vmax.f32 %v992_v35, 0.0  ;;  %v1210_v35 = vld [vmem:[%s1804_s28 + $0x58] sm:$0xff] }
 0x20a   : > { %v1043_v48 = vmax.f32 %v857_v23, 0.0  ;;  %v861_v49 = vadd.f32 %v860_v56, %v701_v41  ;;  %1165 = vadd.xlane.f32.xlu1 %v1164_v52  ;;  %v1168_v45 = vadd.f32 %v1167_v50, %v1040_v53  ;;  %v998_v39 = vadd.f32 %v997_v55, %v701_v41 }
 0x20b   : > { %v862_v47 = vpop.f32.mrf.mxu0  ;;  %v999_v44 = vpop.f32.mrf.mxu1  ;;  %v1045_v36 = vmax.f32 %v994_v54, 0.0 }
 0x20c   : > { %v1172_v42 = vadd.f32 %v1043_v48, %v1042_v51  ;;  %v863_v38 = vadd.f32 %v862_v47, %v701_v41  ;;  %v1169_v37 = vadd.f32 %v1168_v45, %v1041_v46  ;;  %v1046_v26 = vmax.f32 %v861_v49, 0.0 }
 0x20d   : > { %v1000_v18 = vadd.f32 %v999_v44, %v701_v41  ;;  %v1048_v21 = vmax.f32 %v998_v39, 0.0 }
 0x20e   : > { %v1173_v32 = vadd.f32 %v1172_v42, %v1044_v43  ;;  %v1047_v17 = vmax.f32 %v863_v38, 0.0  ;;  %1170 = vadd.xlane.f32.xlu0 %v1169_v37 }
 0x20f   : > { %v1049_v27 = vmax.f32 %v1000_v18, 0.0 }
 0x210   : > { %v1177_v20 = vadd.f32 %v1047_v17, %v1046_v26  ;;  %v1174_v24 = vadd.f32 %v1173_v32, %v1045_v36 }
 0x212   : > { %v1178_v25 = vadd.f32 %v1177_v20, %v1048_v21  ;;  %1175 = vadd.xlane.f32.xlu1 %v1174_v24 }
 0x214   : > { %v1179_v30 = vadd.f32 %v1178_v25, %v1049_v27 }
 0x216   : > { %1180 = vadd.xlane.f32.xlu0 %v1179_v30 }
 0x273   : > { %v1126_v33 = vpop.xlane.xlu0 %1125 }
 0x274   : > { %v1211_v57 = vadd.f32 %v1199_v31, %v1126_v33 }
 0x276   : > { %1224 = vst.msk [vmem:[%s1804_s28] sm:$0xff] %vm1186_vm3, %v1211_v57 }
 0x277   : > { %v1131_v59 = vpop.xlane.xlu1 %1130 }
 0x278   : > { %v1212_v60 = vadd.f32 %v1200_v58, %v1131_v59 }
 0x27a   : > { %1225 = vst.msk [vmem:[%s1804_s28 + $0x8] sm:$0xff] %vm1186_vm3, %v1212_v60 }
 0x27b   : > { %v1136_v62 = vpop.xlane.xlu0 %1135 }
 0x27c   : > { %v1213_v63 = vadd.f32 %v1201_v61, %v1136_v62 }
 0x27e   : > { %1226 = vst.msk [vmem:[%s1804_s28 + $0x10] sm:$0xff] %vm1186_vm3, %v1213_v63 }
 0x27f   : > { %v1141_v2 = vpop.xlane.xlu0 %1140 }
 0x280   : > { %v1214_v4 = vadd.f32 %v1202_v1, %v1141_v2 }
 0x282   : > { %1227 = vst.msk [vmem:[%s1804_s28 + $0x18] sm:$0xff] %vm1186_vm3, %v1214_v4 }
 0x283   : > { %v1146_v6 = vpop.xlane.xlu1 %1145 }
 0x284   : > { %v1215_v11 = vadd.f32 %v1203_v3, %v1146_v6 }
 0x286   : > { %1228 = vst.msk [vmem:[%s1804_s28 + $0x20] sm:$0xff] %vm1186_vm3, %v1215_v11 }
 0x287   : > { %v1151_v15 = vpop.xlane.xlu0 %1150 }
 0x288   : > { %v1216_v19 = vadd.f32 %v1204_v13, %v1151_v15 }
 0x28a   : > { %1229 = vst.msk [vmem:[%s1804_s28 + $0x28] sm:$0xff] %vm1186_vm3, %v1216_v19 }
 0x28b   : > { %v1156_v12 = vpop.xlane.xlu1 %1155 }
 0x28c   : > { %v1217_v14 = vadd.f32 %v1205_v16, %v1156_v12 }
 0x28e   : > { %1230 = vst.msk [vmem:[%s1804_s28 + $0x30] sm:$0xff] %vm1186_vm3, %v1217_v14 }
 0x28f   : > { %v1161_v10 = vpop.xlane.xlu0 %1160 }
 0x290   : > { %v1218_v7 = vadd.f32 %v1206_v9, %v1161_v10 }
 0x292   : > { %1231 = vst.msk [vmem:[%s1804_s28 + $0x38] sm:$0xff] %vm1186_vm3, %v1218_v7 }
 0x293   : > { %v1166_v0 = vpop.xlane.xlu1 %1165 }
 0x294   : > { %v1219_v5 = vadd.f32 %v1207_v8, %v1166_v0 }
 0x296   : > { %1232 = vst.msk [vmem:[%s1804_s28 + $0x40] sm:$0xff] %vm1186_vm3, %v1219_v5 }
 0x297   : > { %v1171_v34 = vpop.xlane.xlu0 %1170 }
 0x298   : > { %v1220_v29 = vadd.f32 %v1208_v40, %v1171_v34 }
 0x29a   : > { %1233 = vst.msk [vmem:[%s1804_s28 + $0x48] sm:$0xff] %vm1186_vm3, %v1220_v29 }
 0x29b   : > { %v1176_v22 = vpop.xlane.xlu1 %1175 }
 0x29c   : > { %v1221_v23 = vadd.f32 %v1209_v28, %v1176_v22 }
 0x29e   : > { %1234 = vst.msk [vmem:[%s1804_s28 + $0x50] sm:$0xff] %vm1186_vm3, %v1221_v23 }
 0x29f   : > { %v1181_v41 = vpop.xlane.xlu0 %1180 }
 0x2a0   : > { %v1222_v56 = vadd.f32 %v1210_v35, %v1181_v41 }
 0x2a2   : > { %1235 = vst.msk [vmem:[%s1804_s28 + $0x58] sm:$0xff] %vm1186_vm3, %v1222_v56 }
 0x2a3 PF: > { %s13_s14 = sadd.s32 1, %s1455_s14   ;;  %s1926_s12 = smov %s1451_s13 }
 0x2a4   : > { %p10_p5 = scmp.ge.s32.totalorder %s13_s14, 4   ;;  %s1927_s13 = smov %s1929_s15 }
 0x2a6   :  { %12 = sbr.rel (!%p10_p5) target bundleno = 2 (0x2), region = 69 }

</bundles_post_ra>
